<compile_context>
chip_gen: v5e
topology: v5e:2x2
jax: 0.10.0
libtpu: 0.0.40
codegen_flags: <defaults>
</compile_context>

<pallas_src>
import functools

import jax
import jax.numpy as jnp
from jax import lax
from jax.experimental import pallas as pl
from jax.experimental.pallas import tpu as pltpu


def _chunk_partial(x_ref, t_ref, m_ref, r0, chunk_rows, lanes, bw_minus_1,
                   valid_limit=None):
    """Partial (8,128) sum of the weighted BCE over chunk_rows rows starting at r0.

    If valid_limit is given, only block-local chunk elements with
    (row*lanes + lane) < valid_limit contribute (tail masking for the ragged
    last block).  valid_limit is a static Python int <= chunk_rows*lanes, so all
    index arithmetic stays comfortably inside int32.
    """
    x = x_ref[pl.ds(r0, chunk_rows), :].astype(jnp.float32)
    t = t_ref[pl.ds(r0, chunk_rows), :].astype(jnp.float32)
    m = m_ref[pl.ds(r0, chunk_rows), :].astype(jnp.float32)

    # loss_weights = 1 - mask + mask * boundary_weight  (single FMA form)
    w = 1.0 + m * bw_minus_1

    # Numerically-stable BCE with logits (same formulation as PyTorch).
    per_elem = jnp.maximum(x, 0.0) - x * t + jnp.log1p(jnp.exp(-jnp.abs(x)))
    vals = w * per_elem

    if valid_limit is not None:
        row = lax.broadcasted_iota(jnp.int32, (chunk_rows, lanes), 0)
        lane = lax.broadcasted_iota(jnp.int32, (chunk_rows, lanes), 1)
        vals = jnp.where(row * lanes + lane < valid_limit, vals, 0.0)

    # Fold sublane-wise into one vreg: pure VPU adds, no cross-lane reduce.
    return vals.reshape(chunk_rows // 8, 8, lanes).sum(axis=0)


def _bce_boundary_kernel(x_ref, t_ref, m_ref, out_ref, *, boundary_weight,
                         chunk_rows, last_valid, needs_mask):
    tile_rows, lanes = x_ref.shape
    num_chunks = tile_rows // chunk_rows           # tile_rows % chunk_rows == 0 by construction
    bw_m1 = jnp.float32(boundary_weight - 1.0)
    zeros8 = jnp.zeros((8, lanes), jnp.float32)

    def sum_chunks(count):
        # `count` is a static Python int.
        if count == 0:
            return zeros8
        if count == 1:
            return _chunk_partial(x_ref, t_ref, m_ref, 0, chunk_rows, lanes, bw_m1)

        def body(c, acc):
            r0 = pl.multiple_of(c * chunk_rows, chunk_rows)
            return acc + _chunk_partial(x_ref, t_ref, m_ref, r0,
                                        chunk_rows, lanes, bw_m1)

        return lax.fori_loop(0, count, body, zeros8, unroll=count <= 8)

    if not needs_mask:
        out_ref[...] = sum_chunks(num_chunks)[None]
    else:
        is_last = pl.program_id(0) == pl.num_programs(0) - 1

        # All blocks except the last run the lean, mask-free path.
        @pl.when(jnp.logical_not(is_last))
        def _():
            out_ref[...] = sum_chunks(num_chunks)[None]

        # Only the last block pays for tail masking, and it skips chunks that
        # are entirely past the valid region.
        @pl.when(is_last)
        def _():
            chunk_elems = chunk_rows * lanes
            full = last_valid // chunk_elems          # static
            rem = last_valid - full * chunk_elems     # static
            acc = sum_chunks(full)
            if rem:
                acc = acc + _chunk_partial(x_ref, t_ref, m_ref, full * chunk_rows,
                                           chunk_rows, lanes, bw_m1,
                                           valid_limit=rem)
            out_ref[...] = acc[None]


def bce_weighted_boundary_loss(inputs, targets, boundary_masks, boundary_weight,
                               *, max_tile_rows=8192, lanes=128):
    """Mean-reduced BCE-with-logits loss with boundary-weighted elements."""
    assert inputs.shape == targets.shape == boundary_masks.shape
    n = inputs.size
    assert n > 0

    # Lane-dense (rows, 128) slab. Pad only up to the next multiple of 128
    # (and to at least 8 rows so the sublane fold is well formed). When
    # n % 128 == 0 and n >= 1024 this is a pure metadata reshape (no HBM copy).
    rows = max(8, -(-n // lanes))
    padded_n = rows * lanes

    def _as_slab(a):
        f = a.reshape(-1)
        if padded_n != n:
            f = jnp.pad(f, (0, padded_n - n))
        return f.reshape(rows, lanes)

    # Targets / masks stay in their natural narrow dtype in HBM; the kernel
    # upcasts to f32 in VMEM.
    x2 = _as_slab(inputs)
    t2 = _as_slab(targets)
    m2 = _as_slab(boundary_masks)

    # Sub-chunk size: <= 256 rows so per-chunk intermediates stay in a few
    # dozen vregs (no VMEM spills of multi-MiB temporaries).
    chunk_rows = min(256, (rows // 8) * 8)

    # Tile: as large as reasonable (amortize ~0.35 us per-step overhead) but
    # aimed at grid >= 2 so both v7x TensorCores get work; multiple of
    # chunk_rows; never larger than the array (no oversized blocks).
    half_rows = -(-rows // 2)
    tile_rows = max(chunk_rows,
                    min(max_tile_rows, (half_rows // chunk_rows) * chunk_rows))
    grid = -(-rows // tile_rows)
    tile_elems = tile_rows * lanes

    needs_mask = (grid * tile_elems != n)
    last_valid = n - (grid - 1) * tile_elems   # static Python int, > 0

    kernel = functools.partial(
        _bce_boundary_kernel,
        boundary_weight=float(boundary_weight),
        chunk_rows=chunk_rows,
        last_valid=last_valid,
        needs_mask=needs_mask,
    )

    partials = pl.pallas_call(
        kernel,
        out_shape=jax.ShapeDtypeStruct((grid, 8, lanes), jnp.float32),
        grid_spec=pltpu.PrefetchScalarGridSpec(
            num_scalar_prefetch=0,
            grid=(grid,),
            in_specs=[
                pl.BlockSpec((tile_rows, lanes), lambda i: (i, 0)),
                pl.BlockSpec((tile_rows, lanes), lambda i: (i, 0)),
                pl.BlockSpec((tile_rows, lanes), lambda i: (i, 0)),
            ],
            out_specs=pl.BlockSpec((1, 8, lanes), lambda i: (i, 0, 0)),
        ),
        compiler_params=pltpu.CompilerParams(
            # Fully parallel grid: per-step partial sums -> megacore-shardable.
            dimension_semantics=("parallel",),
            # ~18 MiB double-buffered worst case at 8192 rows; 32 MiB is safe
            # on every generation (v7x physical VMEM = 64 MiB).
            vmem_limit_bytes=32 * 1024 * 1024,
        ),
    )(x2, t2, m2)

    # Tiny final reduce + mean over N (matches torch reduction='mean').
    return jnp.sum(partials) / jnp.float32(n)


def _reference(inputs, targets, boundary_masks, boundary_weight):
    x = inputs.astype(jnp.float32)
    t = targets.astype(jnp.float32)
    m = boundary_masks.astype(jnp.float32)
    w = 1.0 - m + m * boundary_weight
    per = jnp.maximum(x, 0.0) - x * t + jnp.log1p(jnp.exp(-jnp.abs(x)))
    return jnp.mean(w * per)


if __name__ == "__main__":
    key = jax.random.PRNGKey(0)
    k1, k2, k3 = jax.random.split(key, 3)

    # NCHW-style shape consistent with a segmentation-like use of this loss.
    B, C, H, W = 2, 4, 16, 16
    boundary_weight = 0.3

    inputs = jax.random.normal(k1, (B, C, H, W), dtype=jnp.float32)             # logits (f32)
    targets = (jax.random.uniform(k2, (B, C, H, W)) > 0.5).astype(jnp.bfloat16)  # narrow targets
    boundary_masks = (jax.random.uniform(k3, (B, C, H, W)) > 0.8).astype(jnp.int8)

    loss = bce_weighted_boundary_loss(inputs, targets, boundary_masks, boundary_weight)
    loss = jax.block_until_ready(loss)

    ref = _reference(inputs, targets, boundary_masks, boundary_weight)
    assert jnp.allclose(loss, ref, rtol=1e-5, atol=1e-6), (loss, ref)

    # Also exercise a non-divisible ("ragged") size to verify the masked-tail path.
    xr = jax.random.normal(k1, (3, 1, 17, 19), dtype=jnp.float32)
    tr = (jax.random.uniform(k2, (3, 1, 17, 19)) > 0.5).astype(jnp.bfloat16)
    mr = (jax.random.uniform(k3, (3, 1, 17, 19)) > 0.8).astype(jnp.int8)
    lr = jax.block_until_ready(
        bce_weighted_boundary_loss(xr, tr, mr, boundary_weight))
    rr = _reference(xr, tr, mr, boundary_weight)
    assert jnp.allclose(lr, rr, rtol=1e-5, atol=1e-6), (lr, rr)

    print("KERNEL_OK")
</pallas_src>

<mosaic_0001>
module attributes {stable_mosaic.version = 11 : i64} {
  func.func @_bce_boundary_kernel(%arg0: i32, %arg1: memref<16x128xf32, #tpu.memory_space<vmem>>, %arg2: memref<16x128xbf16, #tpu.memory_space<vmem>>, %arg3: memref<16x128xi8, #tpu.memory_space<vmem>>, %arg4: memref<1x8x128xf32, #tpu.memory_space<vmem>>) attributes {dimension_semantics = [#tpu.dimension_semantics<parallel>], iteration_bounds = array<i64: 1>, scalar_prefetch = 0 : i64, scratch_operands = 0 : i64, tpu.core_type = #tpu.core_type<tc>, window_params = [{transform_indices = @transform_0, window_bounds = array<i64: 16, 128>}, {transform_indices = @transform_1, window_bounds = array<i64: 16, 128>}, {transform_indices = @transform_2, window_bounds = array<i64: 16, 128>}, {transform_indices = @transform_3, window_bounds = array<i64: 1, 8, 128>}]} {
    %c0 = arith.constant 0 : index
    %c0_0 = arith.constant 0 : index
    %0 = vector.load %arg1[%c0, %c0_0] : memref<16x128xf32, #tpu.memory_space<vmem>>, vector<16x128xf32>
    %c0_1 = arith.constant 0 : index
    %c0_2 = arith.constant 0 : index
    %1 = vector.load %arg2[%c0_1, %c0_2] : memref<16x128xbf16, #tpu.memory_space<vmem>>, vector<16x128xbf16>
    %2 = arith.extf %1 : vector<16x128xbf16> to vector<16x128xf32>
    %c0_3 = arith.constant 0 : index
    %c0_4 = arith.constant 0 : index
    %3 = vector.load %arg3[%c0_3, %c0_4] : memref<16x128xi8, #tpu.memory_space<vmem>>, vector<16x128xi8>
    %4 = arith.sitofp %3 : vector<16x128xi8> to vector<16x128xf32>
    %cst = arith.constant -0.699999988 : f32
    %5 = vector.broadcast %cst : f32 to vector<16x128xf32>
    %6 = arith.mulf %4, %5 : vector<16x128xf32>
    %cst_5 = arith.constant 1.000000e+00 : f32
    %7 = vector.broadcast %cst_5 : f32 to vector<16x128xf32>
    %8 = arith.addf %7, %6 : vector<16x128xf32>
    %cst_6 = arith.constant 0.000000e+00 : f32
    %9 = vector.broadcast %cst_6 : f32 to vector<16x128xf32>
    %10 = arith.maximumf %0, %9 : vector<16x128xf32>
    %11 = arith.mulf %0, %2 : vector<16x128xf32>
    %12 = arith.subf %10, %11 : vector<16x128xf32>
    %13 = math.absf %0 : vector<16x128xf32>
    %cst_7 = arith.constant 0.000000e+00 : f32
    %14 = vector.broadcast %cst_7 : f32 to vector<16x128xf32>
    %15 = arith.subf %14, %13 : vector<16x128xf32>
    %16 = math.exp %15 : vector<16x128xf32>
    %17 = math.log1p %16 : vector<16x128xf32>
    %18 = arith.addf %12, %17 : vector<16x128xf32>
    %19 = arith.mulf %8, %18 : vector<16x128xf32>
    %20 = vector.shape_cast %19 : vector<16x128xf32> to vector<2x8x128xf32>
    %cst_8 = arith.constant dense<0.000000e+00> : vector<8x128xf32>
    %21 = vector.multi_reduction <add>, %20, %cst_8 [0] : vector<2x8x128xf32> to vector<8x128xf32>
    %22 = vector.shape_cast %21 : vector<8x128xf32> to vector<1x8x128xf32>
    %c0_9 = arith.constant 0 : index
    %c0_10 = arith.constant 0 : index
    %c0_11 = arith.constant 0 : index
    %23 = vector.load %arg4[%c0_9, %c0_10, %c0_11] : memref<1x8x128xf32, #tpu.memory_space<vmem>>, vector<1x8x128xf32>
    tpu.vector_store %arg4[%c0_9, %c0_10, %c0_11], %22 {strides = array<i32>} : memref<1x8x128xf32, #tpu.memory_space<vmem>>, vector<1x8x128xf32>,
    return
  }
  func.func @transform_0(%arg0: i32) -> (i32, i32) {
    %c0_i32 = arith.constant 0 : i32
    %c0_i32_0 = arith.constant 0 : i32
    return %arg0, %c0_i32 : i32, i32
  }
  func.func @transform_1(%arg0: i32) -> (i32, i32) {
    %c0_i32 = arith.constant 0 : i32
    %c0_i32_0 = arith.constant 0 : i32
    return %arg0, %c0_i32 : i32, i32
  }
  func.func @transform_2(%arg0: i32) -> (i32, i32) {
    %c0_i32 = arith.constant 0 : i32
    %c0_i32_0 = arith.constant 0 : i32
    return %arg0, %c0_i32 : i32, i32
  }
  func.func @transform_3(%arg0: i32) -> (i32, i32, i32) {
    %c0_i32 = arith.constant 0 : i32
    %c0_i32_0 = arith.constant 0 : i32
    %c0_i32_1 = arith.constant 0 : i32
    return %arg0, %c0_i32, %c0_i32_0 : i32, i32, i32
  }
}

</mosaic_0001>

<bundles_post_ra>
// kernel: tpu_custom_call.1
= control target key start
LH: loop header
LB: loop body
LE: loop exit
PB: predicated region body
PF: predicated region fallthrough
CT: control target
= control target key end

     0   :  { %8 = vsyncpa [#allocation3], 0  ;;  %s304_s0 = inlined_call_operand.hbm [shape: f32[16,128], index: 0, kind: input, shape index: {}]   ;;  %s305_s1 = inlined_call_operand.hbm [shape: bf16[16,128], index: 1, kind: input, shape index: {}]   ;;  %s306_s2 = inlined_call_operand.hbm [shape: s8[16,128], index: 2, kind: input, shape index: {}]   ;;  %s307_s3 = inlined_call_operand.hbm [shape: f32[1,8,128], index: 3, kind: output, shape index: {}]  }
   0x1   :  { %9 = vsyncpa [#allocation6], 0  ;;  %s28_s14 = sshll.u32 %s305_s1, 4  ;;  %s29_s14 = int_to_ptr.hbm [resolvable:$true] %s28_s14 }
   0x2   :  { %10 = vsyncpa [#allocation4], 0  ;;  %s262_s15 = smov [#allocation5]   ;;  %s15_s19 = sshll.u32 %s304_s0, 4  ;;  %s16_s19 = int_to_ptr.hbm [resolvable:$true] %s15_s19 }
   0x3   :  { %s30_s16 = sshll.u32 %s262_s15, 4  ;;  %s263_s20 = smov 64   ;;  %s31_s16 = int_to_ptr.vmem [resolvable:$true] %s30_s16 }
   0x4   :  { %s264_s21 = smov 4   ;;  %s265_s22 = smov [#allocation2]  }
   0x5   :  { %36 = dma.hbm_to_vmem [thread:$0]  %s29_s14, 128, %s31_s16, [#allocation6], %s263_s20, %s263_s20, %s264_s21  }
   0x6   :  { %s17_s23 = sshll.u32 %s265_s22, 4  ;;  %s266_s24 = smov 128   ;;  %s18_s23 = int_to_ptr.vmem [resolvable:$true] %s17_s23 }
   0x7   :  { %s267_s25 = smov 8   ;;  %s41_s27 = sshll.u32 %s306_s2, 4  ;;  %s42_s27 = int_to_ptr.hbm [resolvable:$true] %s41_s27 }
   0x8   :  { %23 = dma.hbm_to_vmem [thread:$0]  %s16_s19, 256, %s18_s23, [#allocation3], %s266_s24, %s266_s24, %s267_s25  }
   0x9   :  { %s268_s28 = smov [#allocation7]   ;;  %s269_s30 = smov 32  }
   0xa   :  { %s43_s29 = sshll.u32 %s268_s28, 4  ;;  %s270_s0 = smov 2   ;;  %s44_s29 = int_to_ptr.vmem [resolvable:$true] %s43_s29 }
   0xb   :  { %49 = dma.hbm_to_vmem [thread:$0]  %s42_s27, 64, %s44_s29, [#allocation6], %s269_s30, %s269_s30, %s270_s0  }
   0xc   :  { %256 = dma.done.wait [#allocation3], 256  }
   0xd   :  { %257 = vsyncadd [#allocation3], 4294967040 }
   0xe   :  { %258 = dma.done.wait [#allocation6], 192  }
   0xf   :  { %259 = vsyncadd [#allocation6], 4294967104  ;;  %v62_v0 = vld [vmem:[#allocation2] sm:$0xff]  ;;  %v63_v1 = vld [vmem:[#allocation2 + $0x8] sm:$0xff]  ;;  %s271_s2 = smov [#allocation8]   ;;  %s123_s7 = sshll.u32 %s307_s3, 4  ;;  %s124_s7 = int_to_ptr.hbm [resolvable:$true] %s123_s7 }
  0x10   :  { %v84_v2 = vand.u32 2147483647, %v62_v0  ;;  %v85_v3 = vand.u32 2147483647, %v63_v1  ;;  %v139_v8 = vld [vmem:[#allocation7] sm:$0xf]  }
  0x11   :  { %v135_v9 = vld [vmem:[#allocation5] sm:$0xff]   ;;  %v140_v10 = vunpack.c.0.s8 %v139_v8  ;;  %v141_v12 = vunpack.c.1.s8 %v139_v8  ;;  %v78_v23 = vmax.f32 %v62_v0, 0.0  ;;  %v79_v27 = vmax.f32 %v63_v1, 0.0  ;;  %s121_s4 = sshll.u32 %s271_s2, 4  ;;  %s122_s4 = int_to_ptr.vmem [resolvable:$true] %s121_s4 }
  0x12   :  { %v86_v4 = vsub.f32 0.0, %v84_v2  ;;  %v87_v5 = vsub.f32 0.0, %v85_v3  ;;  %v136_v14 = vunpack.c.l.bf16 %v135_v9  ;;  %v137_v17 = vunpack.c.h.bf16 %v135_v9 }
  0x13   :  { %v72_v20 = vcvt.s32.f32 %v140_v10  ;;  %v73_v21 = vcvt.s32.f32 %v141_v12 }
  0x14   :  { %v88_v6 = vmul.f32 1.442695, %v86_v4  ;;  %v90_v7 = vmul.f32 1.442695, %v87_v5  ;;  %v80_v24 = vmul.f32 %v136_v14, %v62_v0  ;;  %v81_v28 = vmul.f32 %v137_v17, %v63_v1 }
  0x15   :  { %v74_v30 = vmul.f32 -0.7, %v72_v20  ;;  %v75_v31 = vmul.f32 -0.7, %v73_v21 }
  0x16   :  { %152 = vpow2.f32 %v88_v6  ;;  %v82_v34 = vsub.f32 %v78_v23, %v80_v24  ;;  %v83_v37 = vsub.f32 %v79_v27, %v81_v28 }
  0x17   :  { %154 = vpow2.f32 %v90_v7  ;;  %v76_v39 = vadd.f32 1.0, %v74_v30  ;;  %v77_v41 = vadd.f32 1.0, %v75_v31 }
  0x1c   :  { %v153_v11 = vpop.eup %152 }
  0x1d   :  { %v155_v13 = vpop.eup %154  ;;  %v92_v15 = vadd.f32 1.0, %v153_v11  ;;  %v95_v16 = vmul.f32 -0.5, %v153_v11  ;;  %v98_v25 = vand.u32 2147483647, %v153_v11 }
  0x1e   :  { %v101_v18 = vadd.f32 1.0, %v155_v13  ;;  %v104_v19 = vmul.f32 -0.5, %v155_v13  ;;  %v107_v29 = vand.u32 2147483647, %v155_v13 }
  0x1f   :  { %156 = vlog2.f32 %v92_v15  ;;  %v96_v22 = vadd.f32 1.0, %v95_v16  ;;  %vm99_vm0 = vcmp.lt.f32.partialorder %v98_v25, 0.0004427343 }
  0x20   :  { %158 = vlog2.f32 %v101_v18  ;;  %v105_v26 = vadd.f32 1.0, %v104_v19  ;;  %vm108_vm1 = vcmp.lt.f32.partialorder %v107_v29, 0.0004427343 }
  0x21   :  { %v97_v32 = vmul.f32 %v153_v11, %v96_v22 }
  0x22   :  { %v106_v35 = vmul.f32 %v155_v13, %v105_v26 }
  0x25   :  { %v157_v33 = vpop.eup %156 }
  0x26   :  { %v159_v36 = vpop.eup %158  ;;  %v94_v38 = vmul.f32 0.6931472, %v157_v33 }
  0x27   :  { %v103_v40 = vmul.f32 0.6931472, %v159_v36 }
  0x28   :  { %v100_v42 = vsel %vm99_vm0, %v97_v32, %v94_v38 }
  0x29   :  { %v109_v43 = vsel %vm108_vm1, %v106_v35, %v103_v40  ;;  %v110_v44 = vadd.f32 %v100_v42, %v82_v34 }
  0x2a   :  { %v111_v45 = vadd.f32 %v109_v43, %v83_v37 }
  0x2b   :  { %v112_v46 = vmul.f32 %v110_v44, %v76_v39 }
  0x2c   :  { %v113_v47 = vmul.f32 %v111_v45, %v77_v41 }
  0x2e   :  { %v114_v48 = vadd.f32 %v113_v47, %v112_v46 }
  0x30   :  { %115 = vst [vmem:[#allocation8] sm:$0xff] %v114_v48 }
  0x31   :  { %126 = dma.vmem_to_hbm [thread:$0]  %s122_s4, 128, %s124_s7, [#allocation4]  }
  0x32   :  { %260 = dma.done.wait [#allocation4], 128  }
  0x33   :  { %261 = vsyncadd [#allocation4], 4294967168 }
  0x34   :  { %131 = vsyncpa [#allocation3], 1 }
  0x35   :  { %132 = vsyncpa [#allocation6], 1 }
  0x36   :  { %133 = vsyncpa [#allocation4], 1 }

</bundles_post_ra>
